<compile_context>
chip_gen: v5e
topology: v5e:2x2
jax: 0.10.0
libtpu: 0.0.40
codegen_flags: <defaults>
</compile_context>

<pallas_src>
import functools

import jax
import jax.numpy as jnp
from jax.experimental import pallas as pl
from jax.experimental.pallas import tpu as pltpu

NEG_SLOPE = 0.01  # nn.LeakyReLU default negative_slope
LANE = 128
SUBLANE = 8


def _leaky(h):
    return jnp.where(h > 0, h, NEG_SLOPE * h)


def _rl(n):  # round up to lane width (128)
    return max(LANE, ((n + LANE - 1) // LANE) * LANE)


def _rs(n):  # round up to sublane width (8)
    return max(SUBLANE, ((n + SUBLANE - 1) // SUBLANE) * SUBLANE)


def _pad2(a, rows, cols):
    return jnp.pad(a, ((0, rows - a.shape[0]), (0, cols - a.shape[1])))


# ---------------------------- fused Pallas kernel ----------------------------

def fused_forward_kernel(adj_ref, x_ref, maskt_ref,
                         w1_ref, b1_ref, w2_ref, b2_ref, w3_ref, b3_ref,
                         wg_ref, bg_ref, wf1_ref, bf1_ref, wf2_ref, bf2_ref,
                         out_ref, *, num_graphs):
    """Whole SMILE_Classification forward in one kernel.

    out = Linear(LeakyReLU(Linear(Linear(gmp(sage3(sage2(sage1(x))))))))
    where sage_i(x) = LeakyReLU(concat([A@x, x]) @ [W_neigh_i; W_self_i] + b_i).
    All operands are zero-padded to lane-dense (multiple-of-128) feature widths.
    """
    adj = adj_ref[...]                                      # (Np, Np) f32, resident once

    def sage(x, w_cat_ref, b_ref):
        # One MXU matmul instead of two: K doubled via feature concatenation.
        agg = jnp.dot(adj, x, preferred_element_type=jnp.float32)          # A @ x (mean agg)
        xin = jnp.concatenate([agg, x], axis=-1)                           # (Np, 2*Fp)
        h = jnp.dot(xin, w_cat_ref[...],
                    preferred_element_type=jnp.float32) + b_ref[...]
        return _leaky(h)

    h = sage(x_ref[...], w1_ref, b1_ref)                    # SAGEConv1 + LeakyReLU
    h = sage(h, w2_ref, b2_ref)                             # SAGEConv2 + LeakyReLU
    h = sage(h, w3_ref, b3_ref)                             # SAGEConv3 + LeakyReLU

    # global_max_pool: mask passed transposed (Np, B) so features stay on lanes;
    # per-graph masked sublane max, no (B, N, F) broadcast materialized.
    maskt = maskt_ref[...]
    neg = jnp.float32(-1e30)
    pooled = []
    for gi in range(num_graphs):
        m = maskt[:, gi:gi + 1]                             # (Np, 1)
        masked = jnp.where(m > 0, h, neg)                   # (Np, Fp)
        pooled.append(jnp.max(masked, axis=0, keepdims=True))
    g = jnp.concatenate(pooled, axis=0)                     # (B, Fp)

    g = jnp.dot(g, wg_ref[...], preferred_element_type=jnp.float32) + bg_ref[...]   # mol_fc_g1
    # TODO(synk): nn.Dropout is identity at inference; stochastic dropout not modelled.
    g = _leaky(jnp.dot(g, wf1_ref[...],
                       preferred_element_type=jnp.float32) + bf1_ref[...])          # fc[0]+LeakyReLU
    out_ref[...] = jnp.dot(g, wf2_ref[...],
                           preferred_element_type=jnp.float32) + bf2_ref[...]       # fc[3] -> logits


# ---------------------------- model ----------------------------

def init_params(key, num_features_mol=16, hidden_state=32, n_output=2):
    """Deterministic synthetic parameters matching the module's __init__ shapes."""
    f, h = num_features_mol, hidden_state

    def lin(key, fin, fout, scale=0.1):
        kw, kb = jax.random.split(key)
        w = scale * jax.random.normal(kw, (fin, fout), jnp.float32)
        b = scale * jax.random.normal(kb, (1, fout), jnp.float32)
        return w, b

    keys = jax.random.split(key, 9)
    params = {}
    # SAGEConv(in, out, 'mean'): W_neigh (with bias), W_self (no bias)
    for name, (fin, fout), k in [("conv1", (f, 2 * f), 0),
                                 ("conv2", (2 * f, 2 * f), 2),
                                 ("conv3", (2 * f, 4 * f), 4)]:
        wn, b = lin(keys[k], fin, fout)
        ws, _ = lin(keys[k + 1], fin, fout)
        params[name] = (wn, ws, b)
    params["fc_g1"] = lin(keys[6], 4 * f, h)     # mol_fc_g1: Linear(4F, hidden)
    params["fc1"] = lin(keys[7], h, 128)         # fc[0]:     Linear(hidden, 128)
    params["fc2"] = lin(keys[8], 128, n_output)  # fc[3]:     Linear(128, n_output)
    return params


def smile_classification_forward(params, x, edge_index, batch, num_graphs):
    """Inference forward pass (dropout = identity). num_graphs must be static."""
    n, f_in = x.shape
    src, dst = edge_index[0], edge_index[1]

    # ---- plain-JAX glue: dense row-normalized adjacency  A[dst, src] = 1/in_degree(dst)
    adj = jnp.zeros((n, n), jnp.float32).at[dst, src].add(1.0)
    deg = jnp.sum(adj, axis=1, keepdims=True)
    adj = adj / jnp.maximum(deg, 1.0)

    npad = _rs(n)
    adj_p = _pad2(adj, npad, npad)           # padded nodes: zero rows/cols -> no contribution

    # Transposed graph-membership mask (Np, B); padded nodes excluded from pooling.
    maskt = (batch[:, None] == jnp.arange(num_graphs)[None, :]).astype(jnp.float32)
    maskt_p = jnp.pad(maskt, ((0, npad - n), (0, 0)))

    (wn1, ws1, b1) = params["conv1"]
    (wn2, ws2, b2) = params["conv2"]
    (wn3, ws3, b3) = params["conv3"]
    (wg, bg) = params["fc_g1"]
    (wf1, bf1) = params["fc1"]
    (wf2, bf2) = params["fc2"]

    # lane-dense padded feature widths per stage
    f0p = _rl(f_in)            # input features
    f1p = _rl(wn1.shape[1])    # 2F
    f3p = _rl(wn3.shape[1])    # 4F
    hp = _rl(wg.shape[1])      # hidden
    fp = _rl(wf1.shape[1])     # 128
    op = _rl(wf2.shape[1])     # n_output (padded so logits store is unmasked)

    x_p = _pad2(x.astype(jnp.float32), npad, f0p)

    def cat_pad(wn, ws, rows, cols):
        # [W_neigh; W_self] stacked to match concat([A@x, x]) on the K axis.
        return jnp.concatenate([_pad2(wn, rows, cols), _pad2(ws, rows, cols)], axis=0)

    w1c = cat_pad(wn1, ws1, f0p, f1p)
    w2c = cat_pad(wn2, ws2, f1p, f1p)
    w3c = cat_pad(wn3, ws3, f1p, f3p)
    b1p, b2p, b3p = _pad2(b1, 1, f1p), _pad2(b2, 1, f1p), _pad2(b3, 1, f3p)
    wgp, bgp = _pad2(wg, f3p, hp), _pad2(bg, 1, hp)
    wf1p, bf1p = _pad2(wf1, hp, fp), _pad2(bf1, 1, fp)
    wf2p, bf2p = _pad2(wf2, fp, op), _pad2(bf2, 1, op)

    vmem_specs = [pl.BlockSpec(memory_space=pltpu.MemorySpace.VMEM) for _ in range(15)]
    out_padded = pl.pallas_call(
        functools.partial(fused_forward_kernel, num_graphs=num_graphs),
        out_shape=jax.ShapeDtypeStruct((num_graphs, op), jnp.float32),
        in_specs=vmem_specs,
        out_specs=pl.BlockSpec(memory_space=pltpu.MemorySpace.VMEM),
    )(adj_p, x_p, maskt_p,
      w1c, b1p, w2c, b2p, w3c, b3p,
      wgp, bgp, wf1p, bf1p, wf2p, bf2p)

    return out_padded[:, :wf2.shape[1]]       # slice real logits out of lane-dense output


if __name__ == "__main__":
    # Small shapes consistent with the module's constructor
    NUM_FEATURES_MOL = 16
    HIDDEN_STATE = 32
    N_OUTPUT = 2
    N_NODES = 24
    N_EDGES = 48
    N_GRAPHS = 2

    key = jax.random.PRNGKey(0)
    k_param, k_x, k_e = jax.random.split(key, 3)

    params = init_params(k_param, NUM_FEATURES_MOL, HIDDEN_STATE, N_OUTPUT)

    x = jax.random.normal(k_x, (N_NODES, NUM_FEATURES_MOL), jnp.float32)
    edge_index = jax.random.randint(k_e, (2, N_EDGES), 0, N_NODES, jnp.int32)
    # first half of the nodes belong to graph 0, second half to graph 1
    batch = jnp.concatenate([jnp.zeros(N_NODES // 2, jnp.int32),
                             jnp.ones(N_NODES - N_NODES // 2, jnp.int32)])

    fwd = jax.jit(functools.partial(smile_classification_forward, num_graphs=N_GRAPHS))
    out = fwd(params, x, edge_index, batch)
    out = jax.block_until_ready(out)

    assert out.shape == (N_GRAPHS, N_OUTPUT), out.shape
    assert bool(jnp.all(jnp.isfinite(out)))
    print("KERNEL_OK")
</pallas_src>

<mosaic_0001>
module attributes {stable_mosaic.version = 11 : i64} {
  func.func @fused_forward_kernel(%arg0: memref<24x24xf32, #tpu.memory_space<vmem>>, %arg1: memref<24x128xf32, #tpu.memory_space<vmem>>, %arg2: memref<24x2xf32, #tpu.memory_space<vmem>>, %arg3: memref<256x128xf32, #tpu.memory_space<vmem>>, %arg4: memref<1x128xf32, #tpu.memory_space<vmem>>, %arg5: memref<256x128xf32, #tpu.memory_space<vmem>>, %arg6: memref<1x128xf32, #tpu.memory_space<vmem>>, %arg7: memref<256x128xf32, #tpu.memory_space<vmem>>, %arg8: memref<1x128xf32, #tpu.memory_space<vmem>>, %arg9: memref<128x128xf32, #tpu.memory_space<vmem>>, %arg10: memref<1x128xf32, #tpu.memory_space<vmem>>, %arg11: memref<128x128xf32, #tpu.memory_space<vmem>>, %arg12: memref<1x128xf32, #tpu.memory_space<vmem>>, %arg13: memref<128x128xf32, #tpu.memory_space<vmem>>, %arg14: memref<1x128xf32, #tpu.memory_space<vmem>>, %arg15: memref<2x128xf32, #tpu.memory_space<vmem>>) attributes {dimension_semantics = [], scalar_prefetch = 0 : i64, scratch_operands = 0 : i64, tpu.core_type = #tpu.core_type<tc>} {
    %c0 = arith.constant 0 : index
    %c0_0 = arith.constant 0 : index
    %0 = vector.load %arg0[%c0, %c0_0] : memref<24x24xf32, #tpu.memory_space<vmem>>, vector<24x24xf32>
    %c0_1 = arith.constant 0 : index
    %c0_2 = arith.constant 0 : index
    %1 = vector.load %arg1[%c0_1, %c0_2] : memref<24x128xf32, #tpu.memory_space<vmem>>, vector<24x128xf32>
    %cst = arith.constant dense<0.000000e+00> : vector<24x128xf32>
    %2 = tpu.matmul %0, %1, %cst {dimension_numbers = #tpu.dot_dimension_numbers<[1], [0], [0], [1], [0, 0, 1, 1], [], []>} : vector<24x24xf32>, vector<24x128xf32>, vector<24x128xf32> -> vector<24x128xf32>
    %3 = tpu.concatenate %2, %1 in 1 : vector<24x128xf32>, vector<24x128xf32> -> vector<24x256xf32>
    %c0_3 = arith.constant 0 : index
    %c0_4 = arith.constant 0 : index
    %4 = vector.load %arg3[%c0_3, %c0_4] : memref<256x128xf32, #tpu.memory_space<vmem>>, vector<256x128xf32>
    %cst_5 = arith.constant dense<0.000000e+00> : vector<24x128xf32>
    %5 = tpu.matmul %3, %4, %cst_5 {dimension_numbers = #tpu.dot_dimension_numbers<[1], [0], [0], [1], [0, 0, 1, 1], [], []>} : vector<24x256xf32>, vector<256x128xf32>, vector<24x128xf32> -> vector<24x128xf32>
    %c0_6 = arith.constant 0 : index
    %c0_7 = arith.constant 0 : index
    %6 = vector.load %arg4[%c0_6, %c0_7] : memref<1x128xf32, #tpu.memory_space<vmem>>, vector<1x128xf32>
    %7 = vector.broadcast %6 : vector<1x128xf32> to vector<24x128xf32>
    %8 = arith.addf %5, %7 : vector<24x128xf32>
    %cst_8 = arith.constant 0.000000e+00 : f32
    %9 = vector.broadcast %cst_8 : f32 to vector<24x128xf32>
    %10 = arith.cmpf ogt, %8, %9 : vector<24x128xf32>
    %cst_9 = arith.constant 0.00999999977 : f32
    %11 = vector.broadcast %cst_9 : f32 to vector<24x128xf32>
    %12 = arith.mulf %11, %8 : vector<24x128xf32>
    %13 = arith.select %10, %8, %12 : vector<24x128xi1>, vector<24x128xf32>
    %cst_10 = arith.constant dense<0.000000e+00> : vector<24x128xf32>
    %14 = tpu.matmul %0, %13, %cst_10 {dimension_numbers = #tpu.dot_dimension_numbers<[1], [0], [0], [1], [0, 0, 1, 1], [], []>} : vector<24x24xf32>, vector<24x128xf32>, vector<24x128xf32> -> vector<24x128xf32>
    %15 = tpu.concatenate %14, %13 in 1 : vector<24x128xf32>, vector<24x128xf32> -> vector<24x256xf32>
    %c0_11 = arith.constant 0 : index
    %c0_12 = arith.constant 0 : index
    %16 = vector.load %arg5[%c0_11, %c0_12] : memref<256x128xf32, #tpu.memory_space<vmem>>, vector<256x128xf32>
    %cst_13 = arith.constant dense<0.000000e+00> : vector<24x128xf32>
    %17 = tpu.matmul %15, %16, %cst_13 {dimension_numbers = #tpu.dot_dimension_numbers<[1], [0], [0], [1], [0, 0, 1, 1], [], []>} : vector<24x256xf32>, vector<256x128xf32>, vector<24x128xf32> -> vector<24x128xf32>
    %c0_14 = arith.constant 0 : index
    %c0_15 = arith.constant 0 : index
    %18 = vector.load %arg6[%c0_14, %c0_15] : memref<1x128xf32, #tpu.memory_space<vmem>>, vector<1x128xf32>
    %19 = vector.broadcast %18 : vector<1x128xf32> to vector<24x128xf32>
    %20 = arith.addf %17, %19 : vector<24x128xf32>
    %cst_16 = arith.constant 0.000000e+00 : f32
    %21 = vector.broadcast %cst_16 : f32 to vector<24x128xf32>
    %22 = arith.cmpf ogt, %20, %21 : vector<24x128xf32>
    %cst_17 = arith.constant 0.00999999977 : f32
    %23 = vector.broadcast %cst_17 : f32 to vector<24x128xf32>
    %24 = arith.mulf %23, %20 : vector<24x128xf32>
    %25 = arith.select %22, %20, %24 : vector<24x128xi1>, vector<24x128xf32>
    %cst_18 = arith.constant dense<0.000000e+00> : vector<24x128xf32>
    %26 = tpu.matmul %0, %25, %cst_18 {dimension_numbers = #tpu.dot_dimension_numbers<[1], [0], [0], [1], [0, 0, 1, 1], [], []>} : vector<24x24xf32>, vector<24x128xf32>, vector<24x128xf32> -> vector<24x128xf32>
    %27 = tpu.concatenate %26, %25 in 1 : vector<24x128xf32>, vector<24x128xf32> -> vector<24x256xf32>
    %c0_19 = arith.constant 0 : index
    %c0_20 = arith.constant 0 : index
    %28 = vector.load %arg7[%c0_19, %c0_20] : memref<256x128xf32, #tpu.memory_space<vmem>>, vector<256x128xf32>
    %cst_21 = arith.constant dense<0.000000e+00> : vector<24x128xf32>
    %29 = tpu.matmul %27, %28, %cst_21 {dimension_numbers = #tpu.dot_dimension_numbers<[1], [0], [0], [1], [0, 0, 1, 1], [], []>} : vector<24x256xf32>, vector<256x128xf32>, vector<24x128xf32> -> vector<24x128xf32>
    %c0_22 = arith.constant 0 : index
    %c0_23 = arith.constant 0 : index
    %30 = vector.load %arg8[%c0_22, %c0_23] : memref<1x128xf32, #tpu.memory_space<vmem>>, vector<1x128xf32>
    %31 = vector.broadcast %30 : vector<1x128xf32> to vector<24x128xf32>
    %32 = arith.addf %29, %31 : vector<24x128xf32>
    %cst_24 = arith.constant 0.000000e+00 : f32
    %33 = vector.broadcast %cst_24 : f32 to vector<24x128xf32>
    %34 = arith.cmpf ogt, %32, %33 : vector<24x128xf32>
    %cst_25 = arith.constant 0.00999999977 : f32
    %35 = vector.broadcast %cst_25 : f32 to vector<24x128xf32>
    %36 = arith.mulf %35, %32 : vector<24x128xf32>
    %37 = arith.select %34, %32, %36 : vector<24x128xi1>, vector<24x128xf32>
    %c0_26 = arith.constant 0 : index
    %c0_27 = arith.constant 0 : index
    %38 = vector.load %arg2[%c0_26, %c0_27] : memref<24x2xf32, #tpu.memory_space<vmem>>, vector<24x2xf32>
    %39 = vector.extract_strided_slice %38 {offsets = [0, 0], sizes = [24, 1], strides = [1, 1]} : vector<24x2xf32> to vector<24x1xf32>
    %cst_28 = arith.constant 0.000000e+00 : f32
    %40 = vector.broadcast %cst_28 : f32 to vector<24x1xf32>
    %41 = arith.cmpf ogt, %39, %40 : vector<24x1xf32>
    %cst_29 = arith.constant -1.000000e+30 : f32
    %42 = vector.shape_cast %41 : vector<24x1xi1> to vector<24x1xi1>
    %43 = vector.broadcast %42 : vector<24x1xi1> to vector<24x128xi1>
    %44 = vector.broadcast %cst_29 : f32 to vector<24x128xf32>
    %45 = arith.select %43, %37, %44 : vector<24x128xi1>, vector<24x128xf32>
    %cst_30 = arith.constant dense<0xFF800000> : vector<128xf32>
    %46 = vector.multi_reduction <maximumf>, %45, %cst_30 [0] : vector<24x128xf32> to vector<128xf32>
    %47 = vector.shape_cast %46 : vector<128xf32> to vector<1x128xf32>
    %48 = vector.extract_strided_slice %38 {offsets = [0, 1], sizes = [24, 1], strides = [1, 1]} : vector<24x2xf32> to vector<24x1xf32>
    %cst_31 = arith.constant 0.000000e+00 : f32
    %49 = vector.broadcast %cst_31 : f32 to vector<24x1xf32>
    %50 = arith.cmpf ogt, %48, %49 : vector<24x1xf32>
    %cst_32 = arith.constant -1.000000e+30 : f32
    %51 = vector.shape_cast %50 : vector<24x1xi1> to vector<24x1xi1>
    %52 = vector.broadcast %51 : vector<24x1xi1> to vector<24x128xi1>
    %53 = vector.broadcast %cst_32 : f32 to vector<24x128xf32>
    %54 = arith.select %52, %37, %53 : vector<24x128xi1>, vector<24x128xf32>
    %cst_33 = arith.constant dense<0xFF800000> : vector<128xf32>
    %55 = vector.multi_reduction <maximumf>, %54, %cst_33 [0] : vector<24x128xf32> to vector<128xf32>
    %56 = vector.shape_cast %55 : vector<128xf32> to vector<1x128xf32>
    %57 = tpu.concatenate %47, %56 in 0 : vector<1x128xf32>, vector<1x128xf32> -> vector<2x128xf32>
    %c0_34 = arith.constant 0 : index
    %c0_35 = arith.constant 0 : index
    %58 = vector.load %arg9[%c0_34, %c0_35] : memref<128x128xf32, #tpu.memory_space<vmem>>, vector<128x128xf32>
    %cst_36 = arith.constant dense<0.000000e+00> : vector<2x128xf32>
    %59 = tpu.matmul %57, %58, %cst_36 {dimension_numbers = #tpu.dot_dimension_numbers<[1], [0], [0], [1], [0, 0, 1, 1], [], []>} : vector<2x128xf32>, vector<128x128xf32>, vector<2x128xf32> -> vector<2x128xf32>
    %c0_37 = arith.constant 0 : index
    %c0_38 = arith.constant 0 : index
    %60 = vector.load %arg10[%c0_37, %c0_38] : memref<1x128xf32, #tpu.memory_space<vmem>>, vector<1x128xf32>
    %61 = vector.broadcast %60 : vector<1x128xf32> to vector<2x128xf32>
    %62 = arith.addf %59, %61 : vector<2x128xf32>
    %c0_39 = arith.constant 0 : index
    %c0_40 = arith.constant 0 : index
    %63 = vector.load %arg11[%c0_39, %c0_40] : memref<128x128xf32, #tpu.memory_space<vmem>>, vector<128x128xf32>
    %cst_41 = arith.constant dense<0.000000e+00> : vector<2x128xf32>
    %64 = tpu.matmul %62, %63, %cst_41 {dimension_numbers = #tpu.dot_dimension_numbers<[1], [0], [0], [1], [0, 0, 1, 1], [], []>} : vector<2x128xf32>, vector<128x128xf32>, vector<2x128xf32> -> vector<2x128xf32>
    %c0_42 = arith.constant 0 : index
    %c0_43 = arith.constant 0 : index
    %65 = vector.load %arg12[%c0_42, %c0_43] : memref<1x128xf32, #tpu.memory_space<vmem>>, vector<1x128xf32>
    %66 = vector.broadcast %65 : vector<1x128xf32> to vector<2x128xf32>
    %67 = arith.addf %64, %66 : vector<2x128xf32>
    %cst_44 = arith.constant 0.000000e+00 : f32
    %68 = vector.broadcast %cst_44 : f32 to vector<2x128xf32>
    %69 = arith.cmpf ogt, %67, %68 : vector<2x128xf32>
    %cst_45 = arith.constant 0.00999999977 : f32
    %70 = vector.broadcast %cst_45 : f32 to vector<2x128xf32>
    %71 = arith.mulf %70, %67 : vector<2x128xf32>
    %72 = arith.select %69, %67, %71 : vector<2x128xi1>, vector<2x128xf32>
    %c0_46 = arith.constant 0 : index
    %c0_47 = arith.constant 0 : index
    %73 = vector.load %arg13[%c0_46, %c0_47] : memref<128x128xf32, #tpu.memory_space<vmem>>, vector<128x128xf32>
    %cst_48 = arith.constant dense<0.000000e+00> : vector<2x128xf32>
    %74 = tpu.matmul %72, %73, %cst_48 {dimension_numbers = #tpu.dot_dimension_numbers<[1], [0], [0], [1], [0, 0, 1, 1], [], []>} : vector<2x128xf32>, vector<128x128xf32>, vector<2x128xf32> -> vector<2x128xf32>
    %c0_49 = arith.constant 0 : index
    %c0_50 = arith.constant 0 : index
    %75 = vector.load %arg14[%c0_49, %c0_50] : memref<1x128xf32, #tpu.memory_space<vmem>>, vector<1x128xf32>
    %76 = vector.broadcast %75 : vector<1x128xf32> to vector<2x128xf32>
    %77 = arith.addf %74, %76 : vector<2x128xf32>
    %c0_51 = arith.constant 0 : index
    %c0_52 = arith.constant 0 : index
    %78 = vector.load %arg15[%c0_51, %c0_52] : memref<2x128xf32, #tpu.memory_space<vmem>>, vector<2x128xf32>
    tpu.vector_store %arg15[%c0_51, %c0_52], %77 {strides = array<i32>} : memref<2x128xf32, #tpu.memory_space<vmem>>, vector<2x128xf32>,
    return
  }
}

</mosaic_0001>

<bundles_post_ra>
// kernel: smile_classification_forward.1
= control target key start
LH: loop header
LB: loop body
LE: loop exit
PB: predicated region body
PF: predicated region fallthrough
CT: control target
= control target key end

     0   :  { %vm57_vm0 = vcmask 195584   ;;  %s1291_s0 = inlined_call_operand.vmem [shape: f32[24,24], index: 0, kind: input, shape index: {}]   ;;  %s1292_s1 = inlined_call_operand.vmem [shape: f32[24,128], index: 1, kind: input, shape index: {}]   ;;  %s1293_s2 = inlined_call_operand.vmem [shape: f32[24,2], index: 2, kind: input, shape index: {}]   ;;  %s1294_s3 = inlined_call_operand.vmem [shape: f32[256,128], index: 3, kind: input, shape index: {}]   ;;  %s1295_s4 = inlined_call_operand.vmem [shape: f32[1,128], index: 4, kind: input, shape index: {}]   ;;  %s1296_s5 = inlined_call_operand.vmem [shape: f32[256,128], index: 5, kind: input, shape index: {}]   ;;  %s1297_s6 = inlined_call_operand.vmem [shape: f32[1,128], index: 6, kind: input, shape index: {}]   ;;  %s1298_s7 = inlined_call_operand.vmem [shape: f32[256,128], index: 7, kind: input, shape index: {}]   ;;  %s1299_s8 = inlined_call_operand.vmem [shape: f32[1,128], index: 8, kind: input, shape index: {}]   ;;  %s1300_s9 = inlined_call_operand.vmem [shape: f32[128,128], index: 9, kind: input, shape index: {}]   ;;  %s1301_s10 = inlined_call_operand.vmem [shape: f32[1,128], index: 10, kind: input, shape index: {}]   ;;  %s1302_s11 = inlined_call_operand.vmem [shape: f32[128,128], index: 11, kind: input, shape index: {}]   ;;  %s1303_s12 = inlined_call_operand.vmem [shape: f32[1,128], index: 12, kind: input, shape index: {}]   ;;  %s1304_s13 = inlined_call_operand.vmem [shape: f32[128,128], index: 13, kind: input, shape index: {}]   ;;  %s1305_s14 = inlined_call_operand.vmem [shape: f32[1,128], index: 14, kind: input, shape index: {}]   ;;  %s1306_s15 = inlined_call_operand.hbm [shape: f32[2,128], index: 15, kind: output, shape index: {}]  }
   0x1   :  { %v768_v0 = vld [vmem:[%s1292_s1 + $0x10] sm:$0xff]  ;;  %v773_v1 = vld [vmem:[%s1292_s1 + $0x8] sm:$0xff]  ;;  %v779_v2 = vld [vmem:[%s1292_s1] sm:$0xff] }
   0x2   :  { %80 = vmatpush.msra.mxu0 %v768_v0  ;;  %v124_v3 = vld [vmem:[%s1294_s3 + $0xf8] sm:$0xff]  ;;  %v123_v4 = vld [vmem:[%s1294_s3 + $0xf0] sm:$0xff]  ;;  %v794_v6 = vld [vmem:[%s1291_s0] sm:$0xff] }
   0x3   :  { %v108_v5 = vld [vmem:[%s1294_s3 + $0x78] sm:$0xff]  ;;  %155 = vmatpush.msra.mxu2 %v124_v3  ;;  %v107_v7 = vld [vmem:[%s1294_s3 + $0x70] sm:$0xff]  ;;  %v122_v8 = vld [vmem:[%s1294_s3 + $0xe8] sm:$0xff] }
   0x4   :  { %81 = vmatpush.msra.mxu0 %v773_v1  ;;  %129 = vmatpush.msra.mxu1 %v108_v5  ;;  %v106_v9 = vld [vmem:[%s1294_s3 + $0x68] sm:$0xff]  ;;  %v121_v10 = vld [vmem:[%s1294_s3 + $0xe0] sm:$0xff]  ;;  %v120_v12 = vld [vmem:[%s1294_s3 + $0xd8] sm:$0xff] }
   0x5   :  { %156 = vmatpush.msra.mxu2 %v123_v4  ;;  %v105_v11 = vld [vmem:[%s1294_s3 + $0x60] sm:$0xff]  ;;  %v104_v13 = vld [vmem:[%s1294_s3 + $0x58] sm:$0xff]  ;;  %v119_v14 = vld [vmem:[%s1294_s3 + $0xd0] sm:$0xff] }
   0x6   :  { %82 = vmatpush.msra.mxu0 %v779_v2  ;;  %130 = vmatpush.msra.mxu1 %v107_v7  ;;  %v826_v15 = vld [vmem:[%s1291_s0 + $0x8] sm:$0xff]  ;;  %v103_v17 = vld [vmem:[%s1294_s3 + $0x50] sm:$0xff]  ;;  %v117_v19 = vld [vmem:[%s1294_s3 + $0xc0] sm:$0xff] }
   0x7   :  { %633 = vmatmul.msk.f32.vlgmr.msra.gmra.mxu0 %vm57_vm0, %v794_v6  ;;  %157 = vmatpush.msra.mxu2 %v122_v8  ;;  %v118_v16 = vld [vmem:[%s1294_s3 + $0xc8] sm:$0xff] }
   0x8   :  { %131 = vmatpush.msra.mxu1 %v106_v9  ;;  %v102_v18 = vld [vmem:[%s1294_s3 + $0x48] sm:$0xff] }
   0x9   :  { %158 = vmatpush.msra.mxu2 %v121_v10 }
   0xa   :  { %132 = vmatpush.msra.mxu1 %v105_v11 }
   0xb   :  { %159 = vmatpush.msra.mxu2 %v120_v12 }
   0xc   :  { %133 = vmatpush.msra.mxu1 %v104_v13 }
   0xd   :  { %160 = vmatpush.msra.mxu2 %v119_v14 }
   0xe   :  { %134 = vmatpush.msra.mxu1 %v103_v17 }
   0xf   :  { %634 = vmatmul.msk.f32.gmra.mxu0 %vm57_vm0, %v826_v15 }
  0x10   :  { %20 = vsyncpa [#allocation3], 0  ;;  %161 = vmatpush.msra.mxu2 %v118_v16  ;;  %v101_v20 = vld [vmem:[%s1294_s3 + $0x40] sm:$0xff]  ;;  %135 = vmatpush.msra.mxu1 %v102_v18  ;;  %v116_v21 = vld [vmem:[%s1294_s3 + $0xb8] sm:$0xff]  ;;  %s684_s28 = smov [#allocation2]  }
  0x11   :  { %v100_v22 = vld [vmem:[%s1294_s3 + $0x38] sm:$0xff]  ;;  %v115_v23 = vld [vmem:[%s1294_s3 + $0xb0] sm:$0xff]  ;;  %v114_v26 = vld [vmem:[%s1294_s3 + $0xa8] sm:$0xff]  ;;  %s622_s29 = sshll.u32 %s684_s28, 4  ;;  %s623_s29 = int_to_ptr.vmem [resolvable:$true] %s622_s29 }
  0x12   :  { %162 = vmatpush.msra.mxu2 %v117_v19  ;;  %136 = vmatpush.msra.mxu1 %v101_v20  ;;  %v857_v24 = vld [vmem:[%s1291_s0 + $0x10] sm:$0xff]  ;;  %v98_v27 = vld [vmem:[%s1294_s3 + $0x28] sm:$0xff]  ;;  %v113_v28 = vld [vmem:[%s1294_s3 + $0xa0] sm:$0xff] }
  0x13   :  { %v99_v25 = vld [vmem:[%s1294_s3 + $0x30] sm:$0xff]  ;;  %v97_v29 = vld [vmem:[%s1294_s3 + $0x20] sm:$0xff]  ;;  %v112_v30 = vld [vmem:[%s1294_s3 + $0x98] sm:$0xff] }
  0x14   :  { %163 = vmatpush.msra.mxu2 %v116_v21  ;;  %137 = vmatpush.msra.mxu1 %v100_v22  ;;  %v96_v31 = vld [vmem:[%s1294_s3 + $0x18] sm:$0xff]  ;;  %v111_v32 = vld [vmem:[%s1294_s3 + $0x90] sm:$0xff]  ;;  %v110_v34 = vld [vmem:[%s1294_s3 + $0x88] sm:$0xff] }
  0x15   :  { %v95_v33 = vld [vmem:[%s1294_s3 + $0x10] sm:$0xff]  ;;  %v94_v35 = vld [vmem:[%s1294_s3 + $0x8] sm:$0xff]  ;;  %v109_v36 = vld [vmem:[%s1294_s3 + $0x80] sm:$0xff] }
  0x16   :  { %164 = vmatpush.msra.mxu2 %v115_v23  ;;  %138 = vmatpush.msra.mxu1 %v99_v25  ;;  %v93_v37 = vld [vmem:[%s1294_s3] sm:$0xff]  ;;  %v247_v60 = vld [vmem:[%s1296_s5 + $0xf8] sm:$0xff]  ;;  %v246_v61 = vld [vmem:[%s1296_s5 + $0xf0] sm:$0xff] }
  0x17   :  { %635 = vmatmul.msk.f32.gmra.mxu0 %vm57_vm0, %v857_v24  ;;  %v650_v45 = vld [vmem:[%s1295_s4] ss:$0 sm:$0xff]  ;;  %v245_v62 = vld [vmem:[%s1296_s5 + $0xe8] sm:$0xff]  ;;  %v239_v4 = vld [vmem:[%s1296_s5 + $0xb8] sm:$0xff]  ;;  %s624_s4 = sshll.u32 %s1306_s15, 4  ;;  %s625_s4 = int_to_ptr.hbm [resolvable:$true] %s624_s4 }
  0x18   :  { %165 = vmatpush.msra.mxu2 %v114_v26  ;;  %139 = vmatpush.msra.mxu1 %v98_v27  ;;  %v244_v63 = vld [vmem:[%s1296_s5 + $0xe0] sm:$0xff]  ;;  %v238_v5 = vld [vmem:[%s1296_s5 + $0xb0] sm:$0xff]  ;;  %v231_v7 = vld [vmem:[%s1296_s5 + $0x78] sm:$0xff] }
  0x19   :  { %v240_v3 = vld [vmem:[%s1296_s5 + $0xc0] sm:$0xff]  ;;  %v230_v8 = vld [vmem:[%s1296_s5 + $0x70] sm:$0xff]  ;;  %252 = vmatpush.msrb.mxu0 %v231_v7  ;;  %v237_v9 = vld [vmem:[%s1296_s5 + $0xa8] sm:$0xff] }
  0x1a   :  { %166 = vmatpush.msra.mxu2 %v113_v28  ;;  %140 = vmatpush.msra.mxu1 %v97_v29  ;;  %v229_v10 = vld [vmem:[%s1296_s5 + $0x68] sm:$0xff]  ;;  %v236_v11 = vld [vmem:[%s1296_s5 + $0xa0] sm:$0xff]  ;;  %v235_v13 = vld [vmem:[%s1296_s5 + $0x98] sm:$0xff] }
  0x1b   :  { %253 = vmatpush.msrb.mxu0 %v230_v8  ;;  %v228_v12 = vld [vmem:[%s1296_s5 + $0x60] sm:$0xff]  ;;  %v227_v14 = vld [vmem:[%s1296_s5 + $0x58] sm:$0xff]  ;;  %v234_v16 = vld [vmem:[%s1296_s5 + $0x90] sm:$0xff] }
  0x1c   :  { %167 = vmatpush.msra.mxu2 %v112_v30  ;;  %141 = vmatpush.msra.mxu1 %v96_v31  ;;  %v226_v17 = vld [vmem:[%s1296_s5 + $0x50] sm:$0xff]  ;;  %v233_v18 = vld [vmem:[%s1296_s5 + $0x88] sm:$0xff]  ;;  %v232_v20 = vld [vmem:[%s1296_s5 + $0x80] sm:$0xff] }
  0x1d   :  { %254 = vmatpush.msrb.mxu0 %v229_v10  ;;  %v225_v19 = vld [vmem:[%s1296_s5 + $0x48] sm:$0xff]  ;;  %v224_v21 = vld [vmem:[%s1296_s5 + $0x40] sm:$0xff]  ;;  %v223_v22 = vld [vmem:[%s1296_s5 + $0x38] sm:$0xff] }
  0x1e   :  { %168 = vmatpush.msra.mxu2 %v111_v32  ;;  %142 = vmatpush.msra.mxu1 %v95_v33  ;;  %v222_v23 = vld [vmem:[%s1296_s5 + $0x30] sm:$0xff]  ;;  %v221_v25 = vld [vmem:[%s1296_s5 + $0x28] sm:$0xff]  ;;  %v220_v26 = vld [vmem:[%s1296_s5 + $0x20] sm:$0xff] }
  0x1f   :  { %255 = vmatpush.msrb.mxu0 %v228_v12  ;;  %v219_v27 = vld [vmem:[%s1296_s5 + $0x18] sm:$0xff]  ;;  %v218_v28 = vld [vmem:[%s1296_s5 + $0x10] sm:$0xff]  ;;  %v217_v29 = vld [vmem:[%s1296_s5 + $0x8] sm:$0xff] }
  0x20   :  { %169 = vmatpush.msra.mxu2 %v110_v34  ;;  %143 = vmatpush.msra.mxu1 %v94_v35  ;;  %v216_v30 = vld [vmem:[%s1296_s5] sm:$0xff]  ;;  %v370_v34 = vld [vmem:[%s1298_s7 + $0xf8] sm:$0xff]  ;;  %v369_v35 = vld [vmem:[%s1298_s7 + $0xf0] sm:$0xff] }
  0x21   :  { %256 = vmatpush.msrb.mxu0 %v227_v14  ;;  %v350_v8 = vld [vmem:[%s1298_s7 + $0x58] sm:$0xff]  ;;  %v348_v12 = vld [vmem:[%s1298_s7 + $0x48] sm:$0xff]  ;;  %v343_v14 = vld [vmem:[%s1298_s7 + $0x20] sm:$0xff] }
  0x22   :  { %170 = vmatpush.msra.mxu2 %v109_v36  ;;  %144 = vmatpush.msra.mxu1 %v93_v37  ;;  %v368_v36 = vld [vmem:[%s1298_s7 + $0xe8] sm:$0xff]  ;;  %v367_v37 = vld [vmem:[%s1298_s7 + $0xe0] sm:$0xff] }
  0x23   :  { %171 = vmatmul.f32.vlgmr.msra.gmra.mxu2 %v779_v2  ;;  %v241_v2 = vld [vmem:[%s1296_s5 + $0xc8] sm:$0xff]  ;;  %257 = vmatpush.msrb.mxu0 %v226_v17  ;;  %v341_v17 = vld [vmem:[%s1298_s7 + $0x10] sm:$0xff] }
  0x25   :  { %258 = vmatpush.msrb.mxu0 %v225_v19  ;;  %v339_v19 = vld [vmem:[%s1298_s7] sm:$0xff] }
  0x27   :  { %259 = vmatpush.msrb.mxu0 %v224_v21  ;;  %v438_v21 = vld [vmem:[%s1293_s2 + $0x10] sm:$0xff] }
  0x28   :  { %vm441_vm8 = vcmp.gt.f32.partialorder %v438_v21, 0.0 }
  0x29   :  { %260 = vmatpush.msrb.mxu0 %v223_v22  ;;  %v682_v22 = vmov 1  }
  0x2a   :  { %646 = vset.pattern.permute.xlu1 %v682_v22 }
  0x2b   :  { %174 = vmatmul.f32.gmra.mxu2 %v773_v1  ;;  %v242_v1 = vld [vmem:[%s1296_s5 + $0xd0] sm:$0xff]  ;;  %261 = vmatpush.msrb.mxu0 %v222_v23  ;;  %v683_v23 = vmov 0  }
  0x2c   :  { %645 = vset.pattern.permute.xlu0 %v683_v23  ;;  %647 = vset.pattern.permute.xlu2 %v683_v23 }
  0x2d   :  { %262 = vmatpush.msrb.mxu0 %v221_v25 }
  0x2f   :  { %263 = vmatpush.msrb.mxu0 %v220_v26  ;;  %v437_v26 = vld [vmem:[%s1293_s2 + $0x8] sm:$0xff] }
  0x30   :  { %vm440_vm9 = vcmp.gt.f32.partialorder %v437_v26, 0.0  ;;  %v539_v26 = vld [vmem:[%s1302_s11 + $0x30] sm:$0xff] }
  0x31   :  { %264 = vmatpush.msrb.mxu0 %v219_v27  ;;  %v444_v27 = vsel %vm441_vm8, 1, %v683_v23 }
  0x32   :  { %452 = vperm.xlu2 %647, %v444_v27  }
  0x33   :  { %177 = vmatmul.f32.gmra.mxu2 %v768_v0  ;;  %v243_v0 = vld [vmem:[%s1296_s5 + $0xd8] sm:$0xff]  ;;  %265 = vmatpush.msrb.mxu0 %v218_v28  ;;  %v443_v28 = vsel %vm440_vm9, 1, %v683_v23 }
  0x35   :  { %266 = vmatpush.msrb.mxu0 %v217_v29 }
  0x37   :  { %267 = vmatpush.msrb.mxu0 %v216_v30 }
  0x39   :  { %401 = vmatpush.msra.mxu0 %v370_v34  ;;  %v506_v34 = vld [vmem:[%s1300_s9 + $0x68] sm:$0xff] }
  0x3a   :  { %648 = vset.pattern.permute.xlu2 %v682_v22 }
  0x3b   :  { %402 = vmatpush.msra.mxu0 %v369_v35  ;;  %475 = vperm.xlu2 %648, %v444_v27   ;;  %v505_v35 = vld [vmem:[%s1300_s9 + $0x60] sm:$0xff] }
  0x3d   :  { %403 = vmatpush.msra.mxu0 %v368_v36  ;;  %v504_v36 = vld [vmem:[%s1300_s9 + $0x58] sm:$0xff] }
  0x3f   :  { %404 = vmatpush.msra.mxu0 %v367_v37  ;;  %v503_v37 = vld [vmem:[%s1300_s9 + $0x50] sm:$0xff] }
  0x84   :  { %v84_v38 = vpop.f32.mrf.mxu0 }
  0x85   :  { %145 = vmatmul.f32.vlgmr.msra.gmra.mxu1 %v84_v38  ;;  %v366_v38 = vld [vmem:[%s1298_s7 + $0xd8] sm:$0xff] }
  0x86   :  { %405 = vmatpush.msra.mxu0 %v366_v38  ;;  %v502_v38 = vld [vmem:[%s1300_s9 + $0x48] sm:$0xff] }
  0x8c   :  { %v87_v39 = vpop.f32.mrf.mxu0 }
  0x8d   :  { %148 = vmatmul.f32.gmra.mxu1 %v87_v39  ;;  %v365_v39 = vld [vmem:[%s1298_s7 + $0xd0] sm:$0xff] }
  0x8e   :  { %406 = vmatpush.msra.mxu0 %v365_v39  ;;  %v501_v39 = vld [vmem:[%s1300_s9 + $0x40] sm:$0xff] }
  0x94   :  { %v90_v40 = vpop.f32.mrf.mxu0 }
  0x95   :  { %151 = vmatmul.f32.gmra.mxu1 %v90_v40  ;;  %v364_v40 = vld [vmem:[%s1298_s7 + $0xc8] sm:$0xff] }
  0x96   :  { %407 = vmatpush.msra.mxu0 %v364_v40  ;;  %v500_v40 = vld [vmem:[%s1300_s9 + $0x38] sm:$0xff] }
  0xa6   :  { %v172_v41 = vpop.f32.mrf.mxu2 }
  0xae   :  { %v175_v43 = vpop.f32.mrf.mxu2 }
  0xb6   :  { %v178_v49 = vpop.f32.mrf.mxu2 }
 0x102   :  { %v146_v42 = vpop.f32.mrf.mxu1 }
 0x103   :  { %v147_v47 = vadd.f32 %v650_v45, %v146_v42  ;;  %v362_v42 = vld [vmem:[%s1298_s7 + $0xb8] sm:$0xff] }
 0x105   :  { %v173_v52 = vadd.f32 %v172_v41, %v147_v47  ;;  %v363_v41 = vld [vmem:[%s1298_s7 + $0xc0] sm:$0xff]  ;;  %v357_v47 = vld [vmem:[%s1298_s7 + $0x90] sm:$0xff] }
 0x106   :  { %408 = vmatpush.msra.mxu0 %v363_v41  ;;  %v499_v41 = vld [vmem:[%s1300_s9 + $0x30] sm:$0xff] }
 0x107   :  { %v184_v57 = vmul.f32 0.01, %v173_v52  ;;  %vm181_vm3 = vcmp.gt.f32.partialorder %v173_v52, 0.0 }
 0x108   :  { %409 = vmatpush.msra.mxu0 %v362_v42 }
 0x109   :  { %v187_v59 = vsel %vm181_vm3, %v173_v52, %v184_v57  ;;  %vm491_vm3 = vcmask 1040384  }
 0x10a   :  { %v149_v44 = vpop.f32.mrf.mxu1 }
 0x10b   :  { %v150_v46 = vadd.f32 %v650_v45, %v149_v44  ;;  %v360_v44 = vld [vmem:[%s1298_s7 + $0xa8] sm:$0xff] }
 0x10d   :  { %v176_v50 = vadd.f32 %v175_v43, %v150_v46  ;;  %v361_v43 = vld [vmem:[%s1298_s7 + $0xb0] sm:$0xff]  ;;  %v358_v46 = vld [vmem:[%s1298_s7 + $0x98] sm:$0xff] }
 0x10e   :  { %410 = vmatpush.msra.mxu0 %v361_v43  ;;  %v498_v43 = vld [vmem:[%s1300_s9 + $0x28] sm:$0xff] }
 0x10f   :  { %v185_v55 = vmul.f32 0.01, %v176_v50  ;;  %vm182_vm2 = vcmp.gt.f32.partialorder %v176_v50, 0.0 }
 0x110   :  { %411 = vmatpush.msra.mxu0 %v360_v44  ;;  %v497_v44 = vld [vmem:[%s1300_s9 + $0x20] sm:$0xff] }
 0x111   :  { %v909_v58 = vsel %vm182_vm2, %v176_v50, %v185_v55  ;;  %v651_v50 = vld [vmem:[%s1297_s6] ss:$0 sm:$0xff] }
 0x112   :  { %v152_v48 = vpop.f32.mrf.mxu1 }
 0x113   :  { %v153_v51 = vadd.f32 %v650_v45, %v152_v48  ;;  %v359_v45 = vld [vmem:[%s1298_s7 + $0xa0] sm:$0xff]  ;;  %v356_v48 = vld [vmem:[%s1298_s7 + $0x88] sm:$0xff] }
 0x114   :  { %412 = vmatpush.msra.mxu0 %v359_v45 }
 0x115   :  { %v179_v53 = vadd.f32 %v178_v49, %v153_v51  ;;  %v355_v49 = vld [vmem:[%s1298_s7 + $0x80] sm:$0xff] }
 0x116   :  { %413 = vmatpush.msra.mxu0 %v358_v46  ;;  %v496_v46 = vld [vmem:[%s1300_s9 + $0x18] sm:$0xff] }
 0x117   :  { %vm183_vm1 = vcmp.gt.f32.partialorder %v179_v53, 0.0  ;;  %v186_v54 = vmul.f32 0.01, %v179_v53 }
 0x118   :  { %414 = vmatpush.msra.mxu0 %v357_v47  ;;  %v652_v47 = vld [vmem:[%s1299_s8] ss:$0 sm:$0xff] }
 0x119   :  { %v906_v56 = vsel %vm183_vm1, %v179_v53, %v186_v54 }
 0x11a   :  { %203 = vmatpush.msra.mxu3 %v906_v56  ;;  %415 = vmatpush.msra.mxu0 %v356_v48  ;;  %v495_v48 = vld [vmem:[%s1300_s9 + $0x10] sm:$0xff] }
 0x11c   :  { %204 = vmatpush.msra.mxu3 %v909_v58  ;;  %416 = vmatpush.msra.mxu0 %v355_v49 }
 0x11e   :  { %205 = vmatpush.msra.mxu3 %v187_v59 }
 0x11f   :  { %636 = vmatmul.msk.f32.vlgmr.msra.gmra.mxu3 %vm57_vm0, %v794_v6 }
 0x120   :  { %278 = vmatpush.msrb.mxu3 %v247_v60 }
 0x122   :  { %279 = vmatpush.msrb.mxu3 %v246_v61 }
 0x124   :  { %280 = vmatpush.msrb.mxu3 %v245_v62  ;;  %v354_v62 = vld [vmem:[%s1298_s7 + $0x78] sm:$0xff] }
 0x125   :  { %375 = vmatpush.msrb.mxu2 %v354_v62 }
 0x126   :  { %281 = vmatpush.msrb.mxu3 %v244_v63  ;;  %v353_v63 = vld [vmem:[%s1298_s7 + $0x70] sm:$0xff] }
 0x127   :  { %637 = vmatmul.msk.f32.gmra.mxu3 %vm57_vm0, %v826_v15  ;;  %376 = vmatpush.msrb.mxu2 %v353_v63  ;;  %v545_v63 = vld [vmem:[%s1302_s11 + $0x60] sm:$0xff] }
 0x128   :  { %282 = vmatpush.msrb.mxu3 %v243_v0 }
 0x12a   :  { %283 = vmatpush.msrb.mxu3 %v242_v1  ;;  %v352_v1 = vld [vmem:[%s1298_s7 + $0x68] sm:$0xff] }
 0x12b   :  { %377 = vmatpush.msrb.mxu2 %v352_v1  ;;  %v544_v1 = vld [vmem:[%s1302_s11 + $0x58] sm:$0xff] }
 0x12c   :  { %284 = vmatpush.msrb.mxu3 %v241_v2 }
 0x12e   :  { %285 = vmatpush.msrb.mxu3 %v240_v3 }
 0x12f   :  { %638 = vmatmul.msk.f32.gmra.mxu3 %vm57_vm0, %v857_v24 }
 0x130   :  { %286 = vmatpush.msrb.mxu3 %v239_v4  ;;  %v351_v4 = vld [vmem:[%s1298_s7 + $0x60] sm:$0xff] }
 0x131   :  { %378 = vmatpush.msrb.mxu2 %v351_v4 }
 0x132   :  { %287 = vmatpush.msrb.mxu3 %v238_v5 }
 0x133   :  { %379 = vmatpush.msrb.mxu2 %v350_v8 }
 0x134   :  { %288 = vmatpush.msrb.mxu3 %v237_v9 }
 0x136   :  { %289 = vmatpush.msrb.mxu3 %v236_v11  ;;  %v349_v11 = vld [vmem:[%s1298_s7 + $0x50] sm:$0xff] }
 0x137   :  { %380 = vmatpush.msrb.mxu2 %v349_v11 }
 0x138   :  { %290 = vmatpush.msrb.mxu3 %v235_v13  ;;  %v347_v13 = vld [vmem:[%s1298_s7 + $0x40] sm:$0xff] }
 0x139   :  { %381 = vmatpush.msrb.mxu2 %v348_v12  ;;  %v542_v12 = vld [vmem:[%s1302_s11 + $0x48] sm:$0xff] }
 0x13a   :  { %291 = vmatpush.msrb.mxu3 %v234_v16  ;;  %v342_v16 = vld [vmem:[%s1298_s7 + $0x18] sm:$0xff] }
 0x13b   :  { %382 = vmatpush.msrb.mxu2 %v347_v13 }
 0x13c   :  { %292 = vmatpush.msrb.mxu3 %v233_v18  ;;  %v340_v18 = vld [vmem:[%s1298_s7 + $0x8] sm:$0xff] }
 0x13e   :  { %293 = vmatpush.msrb.mxu3 %v232_v20  ;;  %v436_v20 = vld [vmem:[%s1293_s2] sm:$0xff] }
 0x13f   :  { %294 = vmatmul.f32.vlgmr.msrb.gmra.mxu3 %v187_v59  ;;  %vm439_vm7 = vcmp.gt.f32.partialorder %v436_v20, 0.0 }
 0x140   :  { %v442_v25 = vsel %vm439_vm7, 1, %v683_v23 }
 0x141   :  { %469 = vperm.xlu1 %646, %v442_v25   ;;  %446 = vperm.xlu0 %645, %v442_v25  }
 0x147   :  { %297 = vmatmul.f32.gmra.mxu3 %v909_v58 }
 0x149   :  { %472 = vperm.xlu1 %646, %v443_v28   ;;  %449 = vperm.xlu0 %645, %v443_v28  }
 0x14f   :  { %300 = vmatmul.f32.gmra.mxu3 %v906_v56 }
 0x151   :  { %649 = vset.pattern.permute.xlu0 %v682_v22 }
 0x1a2   :  { %v207_v31 = vpop.f32.mrf.mxu3 }
 0x1a3   :  { %268 = vmatmul.f32.vlgmr.msrb.gmra.mxu0 %v207_v31 }
 0x1aa   :  { %v210_v32 = vpop.f32.mrf.mxu3 }
 0x1ab   :  { %271 = vmatmul.f32.gmra.mxu0 %v210_v32  ;;  %v508_v32 = vld [vmem:[%s1300_s9 + $0x78] sm:$0xff] }
 0x1ac   :  { %513 = vmatpush.msra.mxu3 %v508_v32  ;;  %v537_v32 = vld [vmem:[%s1302_s11 + $0x20] sm:$0xff] }
 0x1b2   :  { %v213_v33 = vpop.f32.mrf.mxu3 }
 0x1b3   :  { %274 = vmatmul.f32.gmra.mxu0 %v213_v33  ;;  %v507_v33 = vld [vmem:[%s1300_s9 + $0x70] sm:$0xff]  ;;  %v470_v49 = vpop.permute.xlu1 %469 }
 0x1b4   :  { %514 = vmatpush.msra.mxu3 %v507_v33  ;;  %vm477_vm12 = vcmp.eq.s32.totalorder %v470_v49, 1  ;;  %v590_v49 = vld [vmem:[%s1304_s13 + $0x70] sm:$0xff] }
 0x1b6   :  { %515 = vmatpush.msra.mxu3 %v506_v34 }
 0x1b8   :  { %516 = vmatpush.msra.mxu3 %v505_v35  ;;  %v536_v35 = vld [vmem:[%s1302_s11 + $0x18] sm:$0xff] }
 0x1ba   :  { %517 = vmatpush.msra.mxu3 %v504_v36 }
 0x1bc   :  { %518 = vmatpush.msra.mxu3 %v503_v37 }
 0x1be   :  { %519 = vmatpush.msra.mxu3 %v502_v38  ;;  %v535_v38 = vld [vmem:[%s1302_s11 + $0x10] sm:$0xff] }
 0x1c0   :  { %520 = vmatpush.msra.mxu3 %v501_v39 }
 0x1c2   :  { %v295_v51 = vpop.f32.mrf.mxu3  ;;  %521 = vmatpush.msra.mxu3 %v500_v40 }
 0x1c4   :  { %522 = vmatpush.msra.mxu3 %v499_v41 }
 0x1c6   :  { %523 = vmatpush.msra.mxu3 %v498_v43 }
 0x1c8   :  { %524 = vmatpush.msra.mxu3 %v497_v44 }
 0x1ca   :  { %v298_v57 = vpop.f32.mrf.mxu3  ;;  %525 = vmatpush.msra.mxu3 %v496_v46  ;;  %v534_v46 = vld [vmem:[%s1302_s11 + $0x8] sm:$0xff] }
 0x1cc   :  { %526 = vmatpush.msra.mxu3 %v495_v48  ;;  %v591_v48 = vld [vmem:[%s1304_s13 + $0x78] sm:$0xff] }
 0x1d2   :  { %v301_v5 = vpop.f32.mrf.mxu3 }
 0x220   :  { %v269_v52 = vpop.f32.mrf.mxu0 }
 0x221   :  { %v270_v53 = vadd.f32 %v651_v50, %v269_v52  ;;  %v447_v52 = vpop.permute.xlu0 %446 }
 0x222   :  { %vm454_vm13 = vcmp.eq.s32.totalorder %v447_v52, 1  ;;  %v587_v52 = vld [vmem:[%s1304_s13 + $0x58] sm:$0xff] }
 0x223   :  { %v296_v54 = vadd.f32 %v295_v51, %v270_v53  ;;  %v493_v51 = vld [vmem:[%s1300_s9] sm:$0xff] }
 0x225   :  { %v307_v55 = vmul.f32 0.01, %v296_v54  ;;  %vm304_vm4 = vcmp.gt.f32.partialorder %v296_v54, 0.0 }
 0x227   :  { %v310_v56 = vsel %vm304_vm4, %v296_v54, %v307_v55 }
 0x228   :  { %v272_v58 = vpop.f32.mrf.mxu0  ;;  %417 = vmatmul.f32.vlgmr.msra.gmra.mxu0 %v310_v56 }
 0x229   :  { %v273_v59 = vadd.f32 %v651_v50, %v272_v58  ;;  %v547_v58 = vld [vmem:[%s1302_s11 + $0x70] sm:$0xff]  ;;  %v450_v4 = vpop.permute.xlu0 %449 }
 0x22a   :  { %vm455_vm15 = vcmp.eq.s32.totalorder %v450_v4, 1 }
 0x22b   :  { %v299_v60 = vadd.f32 %v298_v57, %v273_v59  ;;  %v548_v57 = vld [vmem:[%s1302_s11 + $0x78] sm:$0xff] }
 0x22d   :  { %vm305_vm5 = vcmp.gt.f32.partialorder %v299_v60, 0.0  ;;  %v308_v61 = vmul.f32 0.01, %v299_v60 }
 0x22f   :  { %v311_v0 = vsel %vm305_vm5, %v299_v60, %v308_v61  ;;  %v546_v60 = vld [vmem:[%s1302_s11 + $0x68] sm:$0xff] }
 0x230   :  { %v275_v2 = vpop.f32.mrf.mxu0  ;;  %420 = vmatmul.f32.gmra.mxu0 %v311_v0 }
 0x231   :  { %v276_v3 = vadd.f32 %v651_v50, %v275_v2  ;;  %v494_v50 = vld [vmem:[%s1300_s9 + $0x8] sm:$0xff] }
 0x232   :  { %527 = vmatpush.msra.mxu3 %v494_v50  ;;  %v589_v50 = vld [vmem:[%s1304_s13 + $0x68] sm:$0xff] }
 0x233   :  { %v302_v7 = vadd.f32 %v301_v5, %v276_v3  ;;  %v473_v3 = vpop.permute.xlu1 %472 }
 0x234   :  { %528 = vmatpush.msra.mxu3 %v493_v51  ;;  %vm478_vm14 = vcmp.eq.s32.totalorder %v473_v3, 1  ;;  %v588_v51 = vld [vmem:[%s1304_s13 + $0x60] sm:$0xff] }
 0x235   :  { %vm306_vm6 = vcmp.gt.f32.partialorder %v302_v7, 0.0  ;;  %v309_v9 = vmul.f32 0.01, %v302_v7  ;;  %v654_v3 = vld [vmem:[%s1303_s12] ss:$0 sm:$0xff] }
 0x237   :  { %v312_v10 = vsel %vm306_vm6, %v302_v7, %v309_v9  ;;  %v543_v7 = vld [vmem:[%s1302_s11 + $0x50] sm:$0xff] }
 0x238   :  { %326 = vmatpush.msrb.mxu1 %v312_v10  ;;  %423 = vmatmul.f32.gmra.mxu0 %v312_v10 }
 0x23a   :  { %327 = vmatpush.msrb.mxu1 %v311_v0 }
 0x23c   :  { %328 = vmatpush.msrb.mxu1 %v310_v56  ;;  %v453_v56 = vpop.permute.xlu2 %452 }
 0x23d   :  { %639 = vmatmul.msk.f32.vlgmr.msrb.gmra.mxu1 %vm57_vm0, %v794_v6  ;;  %v346_v6 = vld [vmem:[%s1298_s7 + $0x38] sm:$0xff]  ;;  %vm456_vm2 = vcmp.eq.s32.totalorder %v453_v56, 1 }
 0x23e   :  { %383 = vmatpush.msrb.mxu2 %v346_v6  ;;  %553 = vmatpush.msra.mxu1 %v548_v57  ;;  %v583_v56 = vld [vmem:[%s1304_s13 + $0x38] sm:$0xff]  ;;  %v582_v57 = vld [vmem:[%s1304_s13 + $0x30] sm:$0xff] }
 0x240   :  { %554 = vmatpush.msra.mxu1 %v547_v58  ;;  %v581_v58 = vld [vmem:[%s1304_s13 + $0x28] sm:$0xff] }
 0x242   :  { %555 = vmatpush.msra.mxu1 %v546_v60  ;;  %v579_v60 = vld [vmem:[%s1304_s13 + $0x18] sm:$0xff] }
 0x244   :  { %556 = vmatpush.msra.mxu1 %v545_v63  ;;  %v476_v11 = vpop.permute.xlu2 %475 }
 0x245   :  { %640 = vmatmul.msk.f32.gmra.mxu1 %vm57_vm0, %v826_v15  ;;  %v345_v15 = vld [vmem:[%s1298_s7 + $0x30] sm:$0xff]  ;;  %vm479_vm1 = vcmp.eq.s32.totalorder %v476_v11, 1 }
 0x246   :  { %384 = vmatpush.msrb.mxu2 %v345_v15  ;;  %557 = vmatpush.msra.mxu1 %v544_v1  ;;  %v577_v1 = vld [vmem:[%s1304_s13 + $0x8] sm:$0xff] }
 0x248   :  { %558 = vmatpush.msra.mxu1 %v543_v7 }
 0x24a   :  { %559 = vmatpush.msra.mxu1 %v542_v12 }
 0x24d   :  { %641 = vmatmul.msk.f32.gmra.mxu1 %vm57_vm0, %v857_v24  ;;  %v344_v24 = vld [vmem:[%s1298_s7 + $0x28] sm:$0xff] }
 0x24e   :  { %385 = vmatpush.msrb.mxu2 %v344_v24 }
 0x250   :  { %386 = vmatpush.msrb.mxu2 %v343_v14  ;;  %v541_v14 = vld [vmem:[%s1302_s11 + $0x40] sm:$0xff] }
 0x251   :  { %560 = vmatpush.msra.mxu1 %v541_v14 }
 0x252   :  { %387 = vmatpush.msrb.mxu2 %v342_v16 }
 0x254   :  { %388 = vmatpush.msrb.mxu2 %v341_v17 }
 0x256   :  { %389 = vmatpush.msrb.mxu2 %v340_v18 }
 0x258   :  { %390 = vmatpush.msrb.mxu2 %v339_v19  ;;  %v540_v19 = vld [vmem:[%s1302_s11 + $0x38] sm:$0xff] }
 0x259   :  { %561 = vmatpush.msra.mxu1 %v540_v19 }
 0x25a   :  { %596 = vmatpush.msra.mxu2 %v591_v48 }
 0x25b   :  { %562 = vmatpush.msra.mxu1 %v539_v26 }
 0x25c   :  { %597 = vmatpush.msra.mxu2 %v590_v49 }
 0x25e   :  { %598 = vmatpush.msra.mxu2 %v589_v50 }
 0x260   :  { %599 = vmatpush.msra.mxu2 %v588_v51 }
 0x262   :  { %600 = vmatpush.msra.mxu2 %v587_v52 }
 0x2a5   :  { %v418_v42 = vpop.f32.mrf.mxu0 }
 0x2ad   :  { %v421_v53 = vpop.f32.mrf.mxu0 }
 0x2b5   :  { %v424_v10 = vpop.f32.mrf.mxu0 }
 0x2ba   :  { %v330_v29 = vpop.f32.mrf.mxu1 }
 0x2bb   :  { %391 = vmatmul.f32.vlgmr.msrb.gmra.mxu2 %v330_v29  ;;  %v538_v29 = vld [vmem:[%s1302_s11 + $0x28] sm:$0xff] }
 0x2bc   :  { %563 = vmatpush.msra.mxu1 %v538_v29 }
 0x2be   :  { %564 = vmatpush.msra.mxu1 %v537_v32 }
 0x2c0   :  { %565 = vmatpush.msra.mxu1 %v536_v35 }
 0x2c2   :  { %v333_v30 = vpop.f32.mrf.mxu1  ;;  %566 = vmatpush.msra.mxu1 %v535_v38 }
 0x2c3   :  { %394 = vmatmul.f32.gmra.mxu2 %v333_v30 }
 0x2c4   :  { %567 = vmatpush.msra.mxu1 %v534_v46 }
 0x2ca   :  { %v336_v31 = vpop.f32.mrf.mxu1 }
 0x2cb   :  { %397 = vmatmul.f32.gmra.mxu2 %v336_v31 }
 0x33e   :  { %v392_v45 = vpop.f32.mrf.mxu2 }
 0x33f   :  { %v393_v54 = vadd.f32 %v652_v47, %v392_v45 }
 0x341   :  { %v419_v61 = vadd.f32 %v418_v42, %v393_v54  ;;  %v585_v54 = vld [vmem:[%s1304_s13 + $0x48] sm:$0xff] }
 0x343   :  { %v430_v2 = vmul.f32 0.01, %v419_v61  ;;  %vm427_vm11 = vcmp.gt.f32.partialorder %v419_v61, 0.0 }
 0x345   :  { %v433_v13 = vsel %vm427_vm11, %v419_v61, %v430_v2  ;;  %v653_v61 = vld [vmem:[%s1301_s10] ss:$0 sm:$0xff] }
 0x346   :  { %v395_v55 = vpop.f32.mrf.mxu2  ;;  %v480_v17 = vsel %vm477_vm12, %v433_v13, -1e+30  ;;  %v457_v18 = vsel %vm454_vm13, %v433_v13, -1e+30  ;;  %v576_v2 = vld [vmem:[%s1304_s13] sm:$0xff] }
 0x347   :  { %v396_v59 = vadd.f32 %v652_v47, %v395_v55  ;;  %v584_v55 = vld [vmem:[%s1304_s13 + $0x40] sm:$0xff] }
 0x349   :  { %v422_v62 = vadd.f32 %v421_v53, %v396_v59  ;;  %v586_v53 = vld [vmem:[%s1304_s13 + $0x50] sm:$0xff]  ;;  %v580_v59 = vld [vmem:[%s1304_s13 + $0x20] sm:$0xff] }
 0x34a   :  { %601 = vmatpush.msra.mxu2 %v586_v53 }
 0x34b   :  { %v431_v0 = vmul.f32 0.01, %v422_v62  ;;  %vm428_vm10 = vcmp.gt.f32.partialorder %v422_v62, 0.0 }
 0x34c   :  { %602 = vmatpush.msra.mxu2 %v585_v54 }
 0x34d   :  { %v434_v8 = vsel %vm428_vm10, %v422_v62, %v431_v0  ;;  %v578_v0 = vld [vmem:[%s1304_s13 + $0x10] sm:$0xff] }
 0x34e   :  { %v398_v5 = vpop.f32.mrf.mxu2  ;;  %v481_v15 = vsel %vm478_vm14, %v434_v8, -1e+30  ;;  %v458_v24 = vsel %vm455_vm15, %v434_v8, -1e+30  ;;  %603 = vmatpush.msra.mxu2 %v584_v55 }
 0x34f   :  { %v399_v9 = vadd.f32 %v652_v47, %v398_v5  ;;  %v483_v20 = vmax.f32 %v480_v17, %v481_v15  ;;  %v460_v21 = vmax.f32 %v457_v18, %v458_v24  ;;  %v533_v47 = vld [vmem:[%s1302_s11] sm:$0xff] }
 0x350   :  { %568 = vmatpush.msra.mxu1 %v533_v47  ;;  %604 = vmatpush.msra.mxu2 %v583_v56 }
 0x351   :  { %v425_v6 = vadd.f32 %v424_v10, %v399_v9  ;;  %v655_v9 = vld [vmem:[%s1305_s14] ss:$0 sm:$0xff] }
 0x352   :  { %605 = vmatpush.msra.mxu2 %v582_v57 }
 0x353   :  { %vm429_vm0 = vcmp.gt.f32.partialorder %v425_v6, 0.0  ;;  %v432_v16 = vmul.f32 0.01, %v425_v6 }
 0x354   :  { %606 = vmatpush.msra.mxu2 %v581_v58 }
 0x355   :  { %v435_v22 = vsel %vm429_vm0, %v425_v6, %v432_v16 }
 0x356   :  { %v459_v23 = vsel %vm456_vm2, %v435_v22, -1e+30  ;;  %v482_v25 = vsel %vm479_vm1, %v435_v22, -1e+30  ;;  %607 = vmatpush.msra.mxu2 %v580_v59 }
 0x357   :  { %v461_v27 = vmax.f32 %v460_v21, %v459_v23  ;;  %v484_v28 = vmax.f32 %v483_v20, %v482_v25 }
 0x358   :  { %608 = vmatpush.msra.mxu2 %v579_v60 }
 0x359   :  { %v462_v30 = vrot.slane %v461_v27, 4  ;;  %v485_v31 = vrot.slane %v484_v28, 4 }
 0x35a   :  { %609 = vmatpush.msra.mxu2 %v578_v0 }
 0x35b   :  { %v463_v33 = vmax.f32 %v461_v27, %v462_v30  ;;  %v486_v34 = vmax.f32 %v484_v28, %v485_v31 }
 0x35c   :  { %610 = vmatpush.msra.mxu2 %v577_v1 }
 0x35d   :  { %v464_v36 = vrot.slane %v463_v33, 2  ;;  %v487_v37 = vrot.slane %v486_v34, 2 }
 0x35e   :  { %611 = vmatpush.msra.mxu2 %v576_v2 }
 0x35f   :  { %v465_v39 = vmax.f32 %v463_v33, %v464_v36  ;;  %v488_v40 = vmax.f32 %v486_v34, %v487_v37 }
 0x361   :  { %v466_v41 = vrot.slane %v465_v39, 1  ;;  %v489_v42 = vrot.slane %v488_v40, 1 }
 0x363   :  { %v490_v43 = vmax.f32 %v488_v40, %v489_v42  ;;  %v467_v44 = vmax.f32 %v465_v39, %v466_v41 }
 0x365   :  { %v492_v45 = vsel %vm491_vm3, %v467_v44, %v490_v43 }
 0x366   :  { %529 = vmatmul.f32.vlgmr.msra.gmra.mxu3 %v492_v45 }
 0x3e9   :  { %v530_v62 = vpop.f32.mrf.mxu3 }
 0x3ea   :  { %v531_v63 = vadd.f32 %v653_v61, %v530_v62 }
 0x3ec   :  { %569 = vmatmul.f32.vlgmr.msra.gmra.mxu1 %v531_v63 }
 0x469   :  { %v570_v4 = vpop.f32.mrf.mxu1 }
 0x46a   :  { %v571_v5 = vadd.f32 %v654_v3, %v570_v4 }
 0x46c   :  { %vm573_vm4 = vcmp.gt.f32.partialorder %v571_v5, 0.0  ;;  %v574_v7 = vmul.f32 0.01, %v571_v5 }
 0x46e   :  { %v575_v8 = vsel %vm573_vm4, %v571_v5, %v574_v7 }
 0x46f   :  { %612 = vmatmul.f32.vlgmr.msra.gmra.mxu2 %v575_v8 }
 0x4f2   :  { %v613_v10 = vpop.f32.mrf.mxu2 }
 0x4f3   :  { %v614_v11 = vadd.f32 %v655_v9, %v613_v10 }
 0x4f5   :  { %616 = vst [vmem:[#allocation2] sm:$0x3] %v614_v11 }
 0x4f6   :  { %627 = dma.vmem_to_hbm [thread:$0]  %s623_s29, 32, %s625_s4, [#allocation3]  }
 0x4f7   :  { %680 = dma.done.wait [#allocation3], 32  }
 0x4f8   :  { %681 = vsyncadd [#allocation3], 4294967264 }
 0x4f9   :  { %632 = vsyncpa [#allocation3], 1 }

</bundles_post_ra>
